<compile_context>
chip_gen: v7x
topology: tpu7x:2x2x1
jax: 0.10.0
libtpu: 0.0.40
codegen_flags: <defaults>
</compile_context>

<pallas_src>
import functools

import jax
import jax.numpy as jnp
from jax.experimental import pallas as pl
from jax.experimental.pallas import tpu as pltpu


def _round_up(x, m):
    return ((x + m - 1) // m) * m


# ----------------------------------------------------------------------------
# Fused actor+critic kernel
# ----------------------------------------------------------------------------
def _actor_critic_kernel(x_ref, w1_ref, b12_ref, w2_ref, w3_ref, b3_ref,
                         out_ref):
    """One batch tile through both MLPs (merged, lane-padded weights).

    out_ref columns [0:act_dim]         -> actor mu
    out_ref column  [act_dim:act_dim+1] -> critic value
    """
    x = x_ref[...]
    if x.dtype != w1_ref.dtype:           # trace-time conditional (bf16 path)
        x = x.astype(w1_ref.dtype)

    # Layer 1: shared input, concatenated (+ zero-padded) output features.
    h1 = jnp.tanh(
        jnp.dot(x, w1_ref[...], preferred_element_type=jnp.float32)
        + b12_ref[0:1, :])
    if h1.dtype != w2_ref.dtype:
        h1 = h1.astype(w2_ref.dtype)

    # Layer 2: block-diagonal weights keep actor/critic channels independent.
    h2 = jnp.tanh(
        jnp.dot(h1, w2_ref[...], preferred_element_type=jnp.float32)
        + b12_ref[1:2, :])
    if h2.dtype != w3_ref.dtype:
        h2 = h2.astype(w3_ref.dtype)

    # Layer 3: block-diagonal -> single lane-contiguous (tb, act_dim+1) slab.
    out_ref[...] = (
        jnp.dot(h2, w3_ref[...], preferred_element_type=jnp.float32)
        + b3_ref[...]).astype(out_ref.dtype)


# ----------------------------------------------------------------------------
# Parameter packing: merge actor/critic MLPs and pad hidden to 128 lanes
# ----------------------------------------------------------------------------
def build_fused_params(actor_params, critic_params, weight_dtype=jnp.float32,
                       hidden_pad_multiple=128):
    """Merge actor/critic MLP params into block-structured, lane-padded mats.

    weight_dtype: use jnp.bfloat16 on v6e/v7x to halve weight/activation HBM
    traffic (accumulation and biases stay f32); keep jnp.float32 on v5e
    (no bf16 VPU/EUP there).
    """
    wa1, ba1, wa2, ba2, wa3, ba3 = actor_params
    wc1, bc1, wc2, bc2, wc3, bc3 = critic_params
    assert wa1.shape[0] == wc1.shape[0], "actor/critic obs_dim mismatch"
    assert wa2.shape == wc2.shape, "actor/critic hidden sizes must match"

    w1 = jnp.concatenate([wa1, wc1], axis=1)                    # (obs, 2H)
    w2 = jax.scipy.linalg.block_diag(wa2, wc2)                  # (2H, 2H)
    w3 = jax.scipy.linalg.block_diag(wa3, wc3)                  # (2H, A+1)
    b1 = jnp.concatenate([ba1, bc1], axis=1)                    # (1, 2H)
    b2 = jnp.concatenate([ba2, bc2], axis=1)                    # (1, 2H)
    b3 = jnp.concatenate([ba3, bc3], axis=1)                    # (1, A+1)

    # Zero-pad the fused hidden width to a multiple of 128 lanes.
    # Exact: padded hidden channels are tanh(0 + 0) = 0 and the padded rows
    # of W2/W3 are zero, so they contribute nothing downstream.
    two_h = w2.shape[0]
    hp = _round_up(two_h, hidden_pad_multiple)
    pad = hp - two_h
    if pad:
        w1 = jnp.pad(w1, ((0, 0), (0, pad)))                    # (obs, Hp)
        w2 = jnp.pad(w2, ((0, pad), (0, pad)))                  # (Hp, Hp)
        w3 = jnp.pad(w3, ((0, pad), (0, 0)))                    # (Hp, A+1)
        b1 = jnp.pad(b1, ((0, 0), (0, pad)))
        b2 = jnp.pad(b2, ((0, 0), (0, pad)))
    b12 = jnp.concatenate([b1, b2], axis=0)                     # (2, Hp)

    return (w1.astype(weight_dtype),
            b12.astype(jnp.float32),
            w2.astype(weight_dtype),
            w3.astype(weight_dtype),
            b3.astype(jnp.float32))


# ----------------------------------------------------------------------------
# Wrapper: pallas_call with a batch grid
# ----------------------------------------------------------------------------
@functools.partial(jax.jit, static_argnames=("tile_b", "min_grid"))
def actor_critic_forward(obs, fused_params, log_std, tile_b=8192, min_grid=1):
    """Mirrors ActorCritic.forward: returns (value, (mu, std)).

    tile_b:   batch-tile rows (multiple of 8). Large tiles amortize the
              ~0.35us per-grid-step overhead; VMEM is not a constraint even
              on v7x's 64 MiB at tb=8192.
    min_grid: set to 2 on v7x so dimension_semantics=("parallel",) actually
              engages both TensorCores; leave at 1 on v5e/v6e (1 TC).
    """
    w1, b12, w2, w3, b3 = fused_params
    batch, obs_dim = obs.shape
    hp = w1.shape[1]             # padded fused hidden width
    out_w = w3.shape[1]          # act_dim + 1
    act_dim = out_w - 1

    # Batch tile: whole batch if small, otherwise tile_b; on multi-TC chips
    # force >= min_grid steps when the batch is big enough to split.
    tb = min(tile_b, batch)
    if min_grid > 1 and batch >= 8 * min_grid:
        tb = min(tb, _round_up(pl.cdiv(batch, min_grid), 8))
    grid = (pl.cdiv(batch, tb),)

    param_bytes = sum(int(p.size) * p.dtype.itemsize
                      for p in (w1, b12, w2, w3, b3))
    cost = pl.CostEstimate(
        flops=2 * batch * (obs_dim * hp + hp * hp + hp * out_w),
        transcendentals=2 * batch * hp,
        bytes_accessed=(int(obs.size) * obs.dtype.itemsize
                        + batch * out_w * 4
                        + param_bytes),
    )

    def _param_spec(shape):
        # Grid-invariant: params loaded once, stay VMEM-resident across tiles.
        return pl.BlockSpec(shape, lambda i: (0, 0))

    slab = pl.pallas_call(
        _actor_critic_kernel,
        out_shape=jax.ShapeDtypeStruct((batch, out_w), jnp.float32),
        grid_spec=pltpu.PrefetchScalarGridSpec(
            num_scalar_prefetch=0,
            grid=grid,
            in_specs=[
                pl.BlockSpec((tb, obs_dim), lambda i: (i, 0)),   # obs tile
                _param_spec(w1.shape),
                _param_spec(b12.shape),
                _param_spec(w2.shape),
                _param_spec(w3.shape),
                _param_spec(b3.shape),
            ],
            out_specs=pl.BlockSpec((tb, out_w), lambda i: (i, 0)),
        ),
        compiler_params=pltpu.CompilerParams(
            dimension_semantics=("parallel",),   # 2 TCs on v7x; no-op v5e/v6e
        ),
        cost_estimate=cost,
    )(obs, w1, b12, w2, w3, b3)

    mu = slab[:, :act_dim]
    value = slab[:, act_dim:]
    std = jnp.exp(log_std)       # batch-independent: hoisted out of the kernel
    return value, (mu, std)


# ----------------------------------------------------------------------------
# Deterministic parameter construction (PyTorch nn.Linear default init style)
# ----------------------------------------------------------------------------
def init_mlp_params(key, sizes):
    """Linear layer params, weights stored (in, out), biases (1, out)."""
    params = []
    for fan_in, fan_out in zip(sizes[:-1], sizes[1:]):
        key, kw, kb = jax.random.split(key, 3)
        bound = 1.0 / jnp.sqrt(jnp.float32(fan_in))
        w = jax.random.uniform(kw, (fan_in, fan_out), jnp.float32,
                               minval=-bound, maxval=bound)
        b = jax.random.uniform(kb, (1, fan_out), jnp.float32,
                               minval=-bound, maxval=bound)
        params.extend([w, b])
    return tuple(params), key


def _detect_min_grid():
    """>=2 grid steps only where a chip has 2 TensorCores (v7x)."""
    try:
        kind = jax.devices()[0].device_kind.lower()
        return 2 if "v7" in kind else 1
    except Exception:
        return 1


if __name__ == "__main__":
    # Small shapes consistent with the module:
    #   observation_space.shape[0] = 16, hidden_sizes = (32, 32),
    #   action_space.shape[0] = 4, batch = 8.
    batch, obs_dim, hidden, act_dim = 8, 16, 32, 4

    key = jax.random.PRNGKey(0)
    key, k_obs = jax.random.split(key)
    obs = jax.random.normal(k_obs, (batch, obs_dim), jnp.float32)

    actor_sizes = (obs_dim, hidden, hidden, act_dim)
    critic_sizes = (obs_dim, hidden, hidden, 1)
    actor_params, key = init_mlp_params(key, actor_sizes)
    critic_params, key = init_mlp_params(key, critic_sizes)
    # log_std = -0.05 * ones(act_dim), as in the PyTorch Actor.
    log_std = -0.05 * jnp.ones((act_dim,), jnp.float32)

    # f32 weights here so the allclose check below is exact; on v6e/v7x pass
    # weight_dtype=jnp.bfloat16 (and loosen the tolerance) for the fast path.
    fused_params = build_fused_params(actor_params, critic_params,
                                      weight_dtype=jnp.float32)

    value, (mu, std) = actor_critic_forward(
        obs, fused_params, log_std, tile_b=8192, min_grid=_detect_min_grid())
    jax.block_until_ready((value, mu, std))

    # Reference check in plain JAX (unfused, unpadded).
    def ref_mlp(x, p):
        w1, b1, w2, b2, w3, b3 = p
        h1 = jnp.tanh(x @ w1 + b1)
        h2 = jnp.tanh(h1 @ w2 + b2)
        return h2 @ w3 + b3

    assert value.shape == (batch, 1)
    assert mu.shape == (batch, act_dim)
    assert std.shape == (act_dim,)
    assert jnp.allclose(value, ref_mlp(obs, critic_params), atol=1e-5)
    assert jnp.allclose(mu, ref_mlp(obs, actor_params), atol=1e-5)
    assert jnp.allclose(std, jnp.exp(log_std), atol=1e-6)

    # TODO(synk): torch.distributions.Normal rsample/log_prob belong to
    # Actor.get_action, not the module's forward; (mu, std) fully
    # parameterize the returned policy.

    print("KERNEL_OK")
</pallas_src>

<mosaic_0001>
module attributes {stable_mosaic.version = 11 : i64} {
  func.func @_actor_critic_kernel(%arg0: i32, %arg1: memref<8x16xf32, #tpu.memory_space<vmem>>, %arg2: memref<16x128xf32, #tpu.memory_space<vmem>>, %arg3: memref<2x128xf32, #tpu.memory_space<vmem>>, %arg4: memref<128x128xf32, #tpu.memory_space<vmem>>, %arg5: memref<128x5xf32, #tpu.memory_space<vmem>>, %arg6: memref<1x5xf32, #tpu.memory_space<vmem>>, %arg7: memref<8x5xf32, #tpu.memory_space<vmem>>) attributes {dimension_semantics = [#tpu.dimension_semantics<parallel>], iteration_bounds = array<i64: 1>, scalar_prefetch = 0 : i64, scratch_operands = 0 : i64, tpu.core_type = #tpu.core_type<tc>, window_params = [{transform_indices = @transform_0, window_bounds = array<i64: 8, 16>}, {pipeline_mode = #tpu.pipeline_mode<synchronous>, transform_indices = @transform_1, window_bounds = array<i64: 16, 128>}, {pipeline_mode = #tpu.pipeline_mode<synchronous>, transform_indices = @transform_2, window_bounds = array<i64: 2, 128>}, {pipeline_mode = #tpu.pipeline_mode<synchronous>, transform_indices = @transform_3, window_bounds = array<i64: 128, 128>}, {pipeline_mode = #tpu.pipeline_mode<synchronous>, transform_indices = @transform_4, window_bounds = array<i64: 128, 5>}, {pipeline_mode = #tpu.pipeline_mode<synchronous>, transform_indices = @transform_5, window_bounds = array<i64: 1, 5>}, {transform_indices = @transform_6, window_bounds = array<i64: 8, 5>}]} {
    %c0 = arith.constant 0 : index
    %c0_0 = arith.constant 0 : index
    %0 = vector.load %arg1[%c0, %c0_0] : memref<8x16xf32, #tpu.memory_space<vmem>>, vector<8x16xf32>
    %c0_1 = arith.constant 0 : index
    %c0_2 = arith.constant 0 : index
    %1 = vector.load %arg2[%c0_1, %c0_2] : memref<16x128xf32, #tpu.memory_space<vmem>>, vector<16x128xf32>
    %cst = arith.constant dense<0.000000e+00> : vector<8x128xf32>
    %2 = tpu.matmul %0, %1, %cst {dimension_numbers = #tpu.dot_dimension_numbers<[1], [0], [0], [1], [0, 0, 1, 1], [], []>} : vector<8x16xf32>, vector<16x128xf32>, vector<8x128xf32> -> vector<8x128xf32>
    %c0_3 = arith.constant 0 : index
    %c0_4 = arith.constant 0 : index
    %3 = vector.load %arg3[%c0_3, %c0_4] : memref<2x128xf32, #tpu.memory_space<vmem>>, vector<1x128xf32>
    %4 = vector.broadcast %3 : vector<1x128xf32> to vector<8x128xf32>
    %5 = arith.addf %2, %4 : vector<8x128xf32>
    %6 = math.tanh %5 : vector<8x128xf32>
    %c0_5 = arith.constant 0 : index
    %c0_6 = arith.constant 0 : index
    %7 = vector.load %arg4[%c0_5, %c0_6] : memref<128x128xf32, #tpu.memory_space<vmem>>, vector<128x128xf32>
    %cst_7 = arith.constant dense<0.000000e+00> : vector<8x128xf32>
    %8 = tpu.matmul %6, %7, %cst_7 {dimension_numbers = #tpu.dot_dimension_numbers<[1], [0], [0], [1], [0, 0, 1, 1], [], []>} : vector<8x128xf32>, vector<128x128xf32>, vector<8x128xf32> -> vector<8x128xf32>
    %c1 = arith.constant 1 : index
    %c0_8 = arith.constant 0 : index
    %9 = vector.load %arg3[%c1, %c0_8] : memref<2x128xf32, #tpu.memory_space<vmem>>, vector<1x128xf32>
    %10 = vector.broadcast %9 : vector<1x128xf32> to vector<8x128xf32>
    %11 = arith.addf %8, %10 : vector<8x128xf32>
    %12 = math.tanh %11 : vector<8x128xf32>
    %c0_9 = arith.constant 0 : index
    %c0_10 = arith.constant 0 : index
    %13 = vector.load %arg5[%c0_9, %c0_10] : memref<128x5xf32, #tpu.memory_space<vmem>>, vector<128x5xf32>
    %cst_11 = arith.constant dense<0.000000e+00> : vector<8x5xf32>
    %14 = tpu.matmul %12, %13, %cst_11 {dimension_numbers = #tpu.dot_dimension_numbers<[1], [0], [0], [1], [0, 0, 1, 1], [], []>} : vector<8x128xf32>, vector<128x5xf32>, vector<8x5xf32> -> vector<8x5xf32>
    %c0_12 = arith.constant 0 : index
    %c0_13 = arith.constant 0 : index
    %15 = vector.load %arg6[%c0_12, %c0_13] : memref<1x5xf32, #tpu.memory_space<vmem>>, vector<1x5xf32>
    %16 = vector.broadcast %15 : vector<1x5xf32> to vector<8x5xf32>
    %17 = arith.addf %14, %16 : vector<8x5xf32>
    %c0_14 = arith.constant 0 : index
    %c0_15 = arith.constant 0 : index
    %18 = vector.load %arg7[%c0_14, %c0_15] : memref<8x5xf32, #tpu.memory_space<vmem>>, vector<8x5xf32>
    tpu.vector_store %arg7[%c0_14, %c0_15], %17 {strides = array<i32>} : memref<8x5xf32, #tpu.memory_space<vmem>>, vector<8x5xf32>,
    return
  }
  func.func @transform_0(%arg0: i32) -> (i32, i32) {
    %c0_i32 = arith.constant 0 : i32
    %c0_i32_0 = arith.constant 0 : i32
    return %arg0, %c0_i32 : i32, i32
  }
  func.func @transform_1(%arg0: i32) -> (i32, i32) {
    %c0_i32 = arith.constant 0 : i32
    %c0_i32_0 = arith.constant 0 : i32
    %c0_i32_1 = arith.constant 0 : i32
    return %c0_i32, %c0_i32_0 : i32, i32
  }
  func.func @transform_2(%arg0: i32) -> (i32, i32) {
    %c0_i32 = arith.constant 0 : i32
    %c0_i32_0 = arith.constant 0 : i32
    %c0_i32_1 = arith.constant 0 : i32
    return %c0_i32, %c0_i32_0 : i32, i32
  }
  func.func @transform_3(%arg0: i32) -> (i32, i32) {
    %c0_i32 = arith.constant 0 : i32
    %c0_i32_0 = arith.constant 0 : i32
    %c0_i32_1 = arith.constant 0 : i32
    return %c0_i32, %c0_i32_0 : i32, i32
  }
  func.func @transform_4(%arg0: i32) -> (i32, i32) {
    %c0_i32 = arith.constant 0 : i32
    %c0_i32_0 = arith.constant 0 : i32
    %c0_i32_1 = arith.constant 0 : i32
    return %c0_i32, %c0_i32_0 : i32, i32
  }
  func.func @transform_5(%arg0: i32) -> (i32, i32) {
    %c0_i32 = arith.constant 0 : i32
    %c0_i32_0 = arith.constant 0 : i32
    %c0_i32_1 = arith.constant 0 : i32
    return %c0_i32, %c0_i32_0 : i32, i32
  }
  func.func @transform_6(%arg0: i32) -> (i32, i32) {
    %c0_i32 = arith.constant 0 : i32
    %c0_i32_0 = arith.constant 0 : i32
    return %arg0, %c0_i32 : i32, i32
  }
}

</mosaic_0001>

<bundles_post_ra>
// kernel: actor_critic_forward.1
= control target key start
LH: loop header
LB: loop body
LE: loop exit
PB: predicated region body
PF: predicated region fallthrough
CT: control target
= control target key end

     0   :  { %11 = vsyncpa [#allocation3], 0  ;;  %s744_s0 = inlined_call_operand.hbm [shape: f32[8,16], index: 0, kind: input, shape index: {}]   ;;  %s745_s1 = inlined_call_operand.vmem [shape: f32[16,128], index: 1, kind: input, shape index: {}]   ;;  %s746_s2 = inlined_call_operand.vmem [shape: f32[2,128], index: 2, kind: input, shape index: {}]   ;;  %s747_s3 = inlined_call_operand.vmem [shape: f32[128,128], index: 3, kind: input, shape index: {}]   ;;  %s748_s4 = inlined_call_operand.vmem [shape: f32[128,5], index: 4, kind: input, shape index: {}]   ;;  %s749_s5 = inlined_call_operand.hbm [shape: f32[1,5], index: 5, kind: input, shape index: {}]   ;;  %s750_s6 = inlined_call_operand.vmem [shape: f32[8,5], index: 6, kind: output, shape index: {}]  }
   0x1   :  { %12 = vsyncpa [#allocation5], 0  ;;  %s549_s21 = smov [#allocation2]   ;;  %s550_s23 = smov [#allocation4]  }
   0x2   :  { %s19_s22 = sshll.u32 %s549_s21, 4  ;;  %s37_s24 = sshll.u32 %s550_s23, 4  ;;  %s20_s22 = int_to_ptr.vmem [resolvable:$true] %s19_s22  ;;  %s38_s24 = int_to_ptr.vmem [resolvable:$true] %s37_s24 }
   0x3   :  { %s501_s27 = scalar_lea.hbm %s744_s0, 128 }
   0x4   :  { %p502_p0 = scmp.ne.s32.totalorder %s744_s0, %s501_s27  ;;  %p505_p1 = scmp.lt.u32.totalorder %s501_s27, %s744_s0 }
   0x6   :  { %p507_p2 = pnand %p505_p1, %p502_p0 }
   0x8   :  { %510 = shalt.err (!%p507_p2)
}
   0x9   :  { %s511_s8 = scalar_lea.vmem %s20_s22, 128  ;;  %p516_p4 = scmp.lt.s32.totalorder %s20_s22, %s20_s22 }
   0xa   :  { %p512_p3 = scmp.ne.s32.totalorder %s20_s22, %s511_s8  ;;  %p517_p5 = scmp.lt.s32.totalorder %s511_s8, %s511_s8 }
   0xc   :  { %p518_p6 = por %p517_p5, %p516_p4 }
   0xe   :  { %p519_p7 = pnand %p518_p6, %p512_p3 }
  0x10   :  { %522 = shalt.err (!%p519_p7)
}
  0x11   :  { %22 = dma.hbm_to_vmem [thread:$0]  %s744_s0, 128, %s20_s22, [#allocation3]  }
  0x12   :  { %s523_s13 = scalar_lea.hbm %s749_s5, 16 }
  0x13   :  { %p524_p8 = scmp.ne.s32.totalorder %s749_s5, %s523_s13  ;;  %p527_p9 = scmp.lt.u32.totalorder %s523_s13, %s749_s5 }
  0x15   :  { %p529_p10 = pnand %p527_p9, %p524_p8 }
  0x17   :  { %532 = shalt.err (!%p529_p10)
}
  0x18   :  { %s533_s18 = scalar_lea.vmem %s38_s24, 16  ;;  %s537_s19 = scalar_lea.vmem %s38_s24, 32 }
  0x19   :  { %p534_p11 = scmp.ne.s32.totalorder %s38_s24, %s533_s18  ;;  %p538_p12 = scmp.lt.s32.totalorder %s38_s24, %s38_s24 }
  0x1a   :  { %p539_p13 = scmp.lt.s32.totalorder %s537_s19, %s533_s18 }
  0x1c   :  { %p540_p0 = por %p539_p13, %p538_p12 }
  0x1e   :  { %p541_p1 = pnand %p540_p0, %p534_p11 }
  0x20   :  { %544 = shalt.err (!%p541_p1)
}
  0x21   :  { %40 = dma.hbm_to_vmem [thread:$0]  %s749_s5, 16, %s38_s24, [#allocation5]  }
  0x22   :  { %545 = dma.done.wait [#allocation3], 128  }
  0x23   :  { %546 = vsyncadd [#allocation3], 4294967168 }
  0x24   :  { %547 = dma.done.wait [#allocation5], 16  }
  0x25   :  { %548 = vsyncadd [#allocation5], 4294967280  ;;  %v551_v0 = vmov 0.0|0.0   ;;  %vm552_vm0 = vmmov 0   ;;  %v553_v1 = vmov 0.0   ;;  %v48_v2 = vld [vmem:[%s745_s1] sm:$0xff] }
  0x26   :  { %441 = vmatprep.subr.bf16.mxu0 %v551_v0  ;;  %368 = vmatprep.mubr.msk.f32.mxu0 %vm552_vm0, %v553_v1  ;;  %v49_v3 = vld [vmem:[%s745_s1 + $0x8] sm:$0xff]  ;;  %v130_v5 = vld [vmem:[%s747_s3] sm:$0xff]  ;;  %v132_v7 = vld [vmem:[%s747_s3 + $0x10] sm:$0xff]  ;;  %vm55_vm1 = vcmask 130048   ;;  %vm315_vm2 = vcmask 39936  }
  0x27   :  { %444 = vmatprep.subr.bf16.mxu1 %v551_v0  ;;  %403 = vmatprep.mubr.msk.f32.mxu1 %vm552_vm0, %v553_v1  ;;  %v442_v4 = vpack.c.bf16 %v49_v3, %v48_v2  ;;  %v131_v6 = vld [vmem:[%s747_s3 + $0x8] sm:$0xff]  ;;  %v133_v9 = vld [vmem:[%s747_s3 + $0x18] sm:$0xff]  ;;  %v47_v10 = vld [vmem:[#allocation2] sm:$0xff] }
  0x28   :  { %v445_v8 = vpack.c.bf16 %v131_v6, %v130_v5  ;;  %v448_v11 = vpack.c.bf16 %v133_v9, %v132_v7  ;;  %v134_v12 = vld [vmem:[%s747_s3 + $0x20] sm:$0xff]  ;;  %v135_v13 = vld [vmem:[%s747_s3 + $0x28] sm:$0xff]  ;;  %v136_v15 = vld [vmem:[%s747_s3 + $0x30] sm:$0xff] }
  0x29   :  { %443 = vmatpush3.bf16.msra.mxu0 %v442_v4  ;;  %v451_v14 = vpack.c.bf16 %v135_v13, %v134_v12  ;;  %v137_v16 = vld [vmem:[%s747_s3 + $0x38] sm:$0xff]  ;;  %v138_v18 = vld [vmem:[%s747_s3 + $0x40] sm:$0xff]  ;;  %v139_v19 = vld [vmem:[%s747_s3 + $0x48] sm:$0xff] }
  0x2a   :  { %446 = vmatpush3.bf16.msra.mxu1 %v445_v8  ;;  %468 = vmatprep.subr.bf16.mxu0 %v551_v0  ;;  %v454_v17 = vpack.c.bf16 %v137_v16, %v136_v15  ;;  %v457_v20 = vpack.c.bf16 %v139_v19, %v138_v18  ;;  %v140_v21 = vld [vmem:[%s747_s3 + $0x50] sm:$0xff]  ;;  %v141_v22 = vld [vmem:[%s747_s3 + $0x58] sm:$0xff]  ;;  %v142_v24 = vld [vmem:[%s747_s3 + $0x60] sm:$0xff] }
  0x2b   :  { %447 = vmatprep.subr.bf16.mxu1 %v551_v0  ;;  %v460_v23 = vpack.c.bf16 %v141_v22, %v140_v21  ;;  %v143_v25 = vld [vmem:[%s747_s3 + $0x68] sm:$0xff]  ;;  %v144_v27 = vld [vmem:[%s747_s3 + $0x70] sm:$0xff]  ;;  %v145_v28 = vld [vmem:[%s747_s3 + $0x78] sm:$0xff] }
  0x2c   :  { %369 = vmatmul.mubr.msk.f32.vlgmr.msra.gmra.mrb[0].mxu0 %vm55_vm1, %v47_v10  ;;  %v463_v26 = vpack.c.bf16 %v143_v25, %v142_v24  ;;  %v466_v29 = vpack.c.bf16 %v145_v28, %v144_v27  ;;  %v222_v30 = vld [vmem:[%s748_s4] sm:$0xff]  ;;  %v223_v31 = vld [vmem:[%s748_s4 + $0x8] sm:$0xff]  ;;  %v224_v32 = vld [vmem:[%s748_s4 + $0x10] sm:$0xff] }
  0x2d   :  { %438 = vmatprep.mubr.msk.f32.mxu0 %vm552_vm0, %v553_v1  ;;  %v469_v33 = vpack.c.bf16 %v223_v31, %v222_v30  ;;  %v225_v34 = vld [vmem:[%s748_s4 + $0x18] sm:$0xff]  ;;  %v226_v36 = vld [vmem:[%s748_s4 + $0x20] sm:$0xff]  ;;  %v227_v37 = vld [vmem:[%s748_s4 + $0x28] sm:$0xff] }
  0x2e   :  { %449 = vmatpush3.bf16.msra.mxu1 %v448_v11  ;;  %v472_v35 = vpack.c.bf16 %v225_v34, %v224_v32  ;;  %v475_v38 = vpack.c.bf16 %v227_v37, %v226_v36  ;;  %v228_v39 = vld [vmem:[%s748_s4 + $0x30] sm:$0xff]  ;;  %v229_v40 = vld [vmem:[%s748_s4 + $0x38] sm:$0xff]  ;;  %v230_v42 = vld [vmem:[%s748_s4 + $0x40] sm:$0xff] }
  0x2f   :  { %450 = vmatprep.subr.bf16.mxu1 %v551_v0  ;;  %470 = vmatpush3.bf16.msra.mxu0 %v469_v33  ;;  %v478_v41 = vpack.c.bf16 %v229_v40, %v228_v39  ;;  %v231_v43 = vld [vmem:[%s748_s4 + $0x48] sm:$0xff]  ;;  %v323_v45 = vld [vmem:[%s746_s2] ss:$0 sm:$0xff]  ;;  %v232_v50 = vld [vmem:[%s748_s4 + $0x50] sm:$0xff] }
  0x30   :  { %471 = vmatprep.subr.bf16.mxu0 %v551_v0  ;;  %v481_v44 = vpack.c.bf16 %v231_v43, %v230_v42  ;;  %v233_v51 = vld [vmem:[%s748_s4 + $0x58] sm:$0xff]  ;;  %v234_v53 = vld [vmem:[%s748_s4 + $0x60] sm:$0xff]  ;;  %v235_v54 = vld [vmem:[%s748_s4 + $0x68] sm:$0xff] }
  0x31   :  { %v484_v52 = vpack.c.bf16 %v233_v51, %v232_v50  ;;  %v487_v55 = vpack.c.bf16 %v235_v54, %v234_v53  ;;  %v236_v56 = vld [vmem:[%s748_s4 + $0x70] sm:$0xff]  ;;  %v237_v57 = vld [vmem:[%s748_s4 + $0x78] sm:$0xff]  ;;  %v325_v59 = vld [vmem:[%s746_s2 + $0x1] ss:$0 sm:$0xff] }
  0x32   :  { %452 = vmatpush3.bf16.msra.mxu1 %v451_v14  ;;  %v490_v58 = vpack.c.bf16 %v237_v57, %v236_v56  ;;  %v326_v1 = vld [vmem:[#allocation4] ss:$0 sm:$0xff] }
  0x33   :  { %453 = vmatprep.subr.bf16.mxu1 %v551_v0  ;;  %473 = vmatpush3.bf16.msra.mxu0 %v472_v35 }
  0x34   :  { %474 = vmatprep.subr.bf16.mxu0 %v551_v0 }
  0x36   :  { %455 = vmatpush3.bf16.msra.mxu1 %v454_v17 }
  0x37   :  { %456 = vmatprep.subr.bf16.mxu1 %v551_v0  ;;  %476 = vmatpush3.bf16.msra.mxu0 %v475_v38 }
  0x38   :  { %477 = vmatprep.subr.bf16.mxu0 %v551_v0 }
  0x3a   :  { %458 = vmatpush3.bf16.msra.mxu1 %v457_v20 }
  0x3b   :  { %459 = vmatprep.subr.bf16.mxu1 %v551_v0  ;;  %479 = vmatpush3.bf16.msra.mxu0 %v478_v41 }
  0x3c   :  { %480 = vmatprep.subr.bf16.mxu0 %v551_v0 }
  0x3e   :  { %461 = vmatpush3.bf16.msra.mxu1 %v460_v23 }
  0x3f   :  { %462 = vmatprep.subr.bf16.mxu1 %v551_v0  ;;  %482 = vmatpush3.bf16.msra.mxu0 %v481_v44 }
  0x40   :  { %483 = vmatprep.subr.bf16.mxu0 %v551_v0 }
  0x42   :  { %464 = vmatpush3.bf16.msra.mxu1 %v463_v26 }
  0x43   :  { %465 = vmatprep.subr.bf16.mxu1 %v551_v0  ;;  %485 = vmatpush3.bf16.msra.mxu0 %v484_v52 }
  0x44   :  { %486 = vmatprep.subr.bf16.mxu0 %v551_v0 }
  0x46   :  { %467 = vmatpush3.bf16.msra.mxu1 %v466_v29 }
  0x47   :  { %488 = vmatpush3.bf16.msra.mxu0 %v487_v55 }
  0x48   :  { %489 = vmatprep.subr.bf16.mxu0 %v551_v0 }
  0x4b   :  { %491 = vmatpush3.bf16.msra.mxu0 %v490_v58 }
  0xff   :  { %v125_v46 = vpop.f32.mrb[0].mxu0 }
 0x100   :  { %v126_v47 = vadd.f32 %v323_v45, %v125_v46  ;;  %v370_v48 = vpop.f32.mrb[1].mxu0 }
 0x102   :  { %497 = vtanh.f32 %v126_v47 }
 0x10c   :  { %v498_v49 = vpop.eup %497 }
 0x10d   :  { %404 = vmatmul.mubr.f32.vlgmr.msra.gmra.mrb[0].mxu1 %v498_v49 }
 0x1e0   :  { %v217_v60 = vpop.f32.mrb[0].mxu1 }
 0x1e1   :  { %v218_v61 = vadd.f32 %v325_v59, %v217_v60  ;;  %v405_v62 = vpop.f32.mrb[1].mxu1 }
 0x1e3   :  { %499 = vtanh.f32 %v218_v61 }
 0x1ed   :  { %v500_v63 = vpop.eup %499 }
 0x1ee   :  { %439 = vmatmul.mubr.f32.vlgmr.msra.gmra.mrb[2].mxu0 %v500_v63 }
 0x2c1   :  { %v311_v2 = vpop.f32.mrb[2].mxu0 }
 0x2c2   :  { %v312_v3 = vadd.f32 %v326_v1, %v311_v2  ;;  %v440_v4 = vpop.f32.mrb[3].mxu0 }
 0x2c4   :  { %316 = vst.msk [vmem:[%s750_s6] sm:$0xff] %vm315_vm2, %v312_v3 }
 0x2c5   :  { %321 = vsyncpa [#allocation3], 1 }
 0x2c6   :  { %322 = vsyncpa [#allocation5], 1 }

</bundles_post_ra>
